<compile_context>
chip_gen: v5e
topology: v5e:2x2
jax: 0.10.0
libtpu: 0.0.40
codegen_flags: <defaults>
</compile_context>

<pallas_src>
import functools

import jax
import jax.numpy as jnp
from jax.experimental import pallas as pl
from jax.experimental.pallas import tpu as pltpu


def _round_up(n, m):
    return ((n + m - 1) // m) * m


def _batch_tile_cap():
    """128 on v5-class chips (128x128 MXU), 256 on v6e/v7x (256x256 MXU)."""
    try:
        kind = jax.devices()[0].device_kind.lower()
    except Exception:
        return 256
    return 128 if "v5" in kind else 256


def _vmem_capacity_bytes():
    try:
        return int(pltpu.get_tpu_info().vmem_capacity_bytes)
    except Exception:
        return 64 << 20          # conservative: v7x per-TC VMEM


def _resident_spec(block_shape, index_map):
    """BlockSpec for blocks that are fetched once -> single-buffer them."""
    try:
        return pl.BlockSpec(block_shape, index_map, pipeline_mode=pl.Buffered(1))
    except Exception:            # older jax without pipeline_mode kwarg
        return pl.BlockSpec(block_shape, index_map)


def _lstm_recur_kernel(gx_ref, h0_ref, c0_ref, wh_ref, h_seq_ref, c_ref,
                       h_sc, c_sc, *, store_c_seq):
    """One (batch_tile, timestep) grid point of the fused LSTM recurrence."""
    t = pl.program_id(1)

    @pl.when(t == 0)
    def _init():
        h_sc[...] = h0_ref[...].astype(jnp.float32)
        c_sc[...] = c0_ref[...].astype(jnp.float32)

    Hp = h_sc.shape[-1]                       # multiple of 128 -> lane-aligned slices
    h = h_sc[...].astype(wh_ref.dtype)        # carried state -> matmul dtype
    c = c_sc[...]                             # f32 carry

    # x-part of the gate pre-activations was precomputed outside the recurrence
    # and streamed in f32; only the hidden projection sits on the serial path.
    gates = gx_ref[0] + jnp.dot(h, wh_ref[...], preferred_element_type=jnp.float32)

    i_gate = jax.nn.sigmoid(gates[:, 0 * Hp:1 * Hp])   # input gate
    f_gate = jax.nn.sigmoid(gates[:, 1 * Hp:2 * Hp])   # forget gate
    g_new = jnp.tanh(gates[:, 2 * Hp:3 * Hp])          # new memory candidate
    o_gate = jax.nn.sigmoid(gates[:, 3 * Hp:4 * Hp])   # output gate

    c_next = f_gate * c + i_gate * g_new
    h_next = o_gate * jnp.tanh(c_next)

    h_sc[...] = h_next
    c_sc[...] = c_next
    h_seq_ref[0] = h_next.astype(h_seq_ref.dtype)
    if store_c_seq:
        c_ref[0] = c_next.astype(c_ref.dtype)          # per-step c writeback
    else:
        c_ref[...] = c_next.astype(c_ref.dtype)        # resident block -> only final c hits HBM


def w_lstm_sequence(xs, h0, c0, w_x, w_h, b, *, matmul_dtype=jnp.bfloat16,
                    return_c_seq=False):
    """Apply the LSTM cell over xs[0..T-1].

    Returns (h_seq (T,B,H), c) where c is (T,B,H) if return_c_seq else the
    final (B,H) cell state.

    NOTE: with matmul_dtype=bfloat16 the carried h is re-quantised to bf16 every
    step, so error grows with T; pass matmul_dtype=jnp.float32 for long
    sequences needing tight numerics.
    """
    T, B, I = xs.shape
    H = h0.shape[-1]
    out_dtype = h0.dtype
    mm_dtype = jnp.dtype(matmul_dtype)

    # Lane / sublane aligned padded sizes.
    Ip = _round_up(I, 128)
    Hp = _round_up(H, 128)
    bt = min(_round_up(B, 16), _batch_tile_cap())
    Bp = _round_up(B, bt)

    def pad_to(a, shape):
        pads = [(0, s - d) for d, s in zip(a.shape, shape)]
        return jnp.pad(a, pads) if any(p for _, p in pads) else a

    def pad_gates(w, k, kp):                 # (k, 4*H) -> (kp, 4*Hp), per-gate zero padding
        w4 = w.reshape(k, 4, H)
        w4 = jnp.pad(w4, ((0, kp - k), (0, 0), (0, Hp - H)))
        return w4.reshape(kp, 4 * Hp)

    xs_p = pad_to(xs, (T, Bp, Ip)).astype(mm_dtype)
    h0_p = pad_to(h0, (Bp, Hp))
    c0_p = pad_to(c0, (Bp, Hp))
    wx_p = pad_gates(w_x, I, Ip).astype(mm_dtype)
    wh_p = pad_gates(w_h, H, Hp).astype(mm_dtype)
    b_p = pad_gates(b, 1, 1).astype(jnp.float32)

    # ---- Hoisted, time-independent input projection: one big GEMM (M = T*Bp).
    prec = jax.lax.Precision.HIGHEST if mm_dtype == jnp.dtype(jnp.float32) else None
    gx = jnp.dot(xs_p.reshape(T * Bp, Ip), wx_p,
                 preferred_element_type=jnp.float32, precision=prec)
    gx = gx.reshape(T, Bp, 4 * Hp) + b_p                # (T, Bp, 4*Hp) f32

    grid = (Bp // bt, T)

    in_specs = [
        pl.BlockSpec((1, bt, 4 * Hp), lambda bi, t: (t, bi, 0)),   # gates_x[t] (streamed)
        _resident_spec((bt, Hp), lambda bi, t: (bi, 0)),           # h0 (single-buffered)
        _resident_spec((bt, Hp), lambda bi, t: (bi, 0)),           # c0 (single-buffered)
        _resident_spec((Hp, 4 * Hp), lambda bi, t: (0, 0)),        # W_h (VMEM resident, 1 buf)
    ]
    if return_c_seq:
        c_shape = jax.ShapeDtypeStruct((T, Bp, Hp), out_dtype)
        c_spec = pl.BlockSpec((1, bt, Hp), lambda bi, t: (t, bi, 0))
    else:
        c_shape = jax.ShapeDtypeStruct((Bp, Hp), out_dtype)
        c_spec = pl.BlockSpec((bt, Hp), lambda bi, t: (bi, 0))     # resident; final c only
    out_specs = (pl.BlockSpec((1, bt, Hp), lambda bi, t: (t, bi, 0)), c_spec)
    out_shape = (jax.ShapeDtypeStruct((T, Bp, Hp), out_dtype), c_shape)

    # ---- VMEM budget (resident weights single-buffered + streamed blocks). ----
    mm_sz = mm_dtype.itemsize
    st_sz = jnp.dtype(h0.dtype).itemsize
    out_sz = jnp.dtype(out_dtype).itemsize
    resident = Hp * 4 * Hp * mm_sz + 2 * bt * Hp * st_sz            # W_h + h0 + c0 (1 buf each)
    streamed = 2 * bt * 4 * Hp * 4                                  # gx (2 bufs, f32)
    streamed += 2 * bt * Hp * out_sz                                # h_seq out (2 bufs)
    streamed += (2 if return_c_seq else 1) * bt * Hp * out_sz       # c out
    scratch = 2 * bt * Hp * 4                                       # h/c f32 carry
    temps = 4 * bt * 4 * Hp * 4                                     # gates + elementwise temps
    needed = resident + streamed + scratch + temps

    cap_bytes = _vmem_capacity_bytes()
    vmem_limit = int(min(max(needed + (8 << 20), 16 << 20), cap_bytes - (4 << 20)))
    # TODO(synk): if `needed` still exceeds vmem_limit, W_h / 4H must be tiled
    # through the grid (or pltpu.emit_pipeline) instead of being fully resident.

    kernel = functools.partial(_lstm_recur_kernel, store_c_seq=return_c_seq)

    h_seq_p, c_p = pl.pallas_call(
        kernel,
        out_shape=out_shape,
        grid=grid,
        in_specs=in_specs,
        out_specs=out_specs,
        scratch_shapes=[pltpu.VMEM((bt, Hp), jnp.float32),
                        pltpu.VMEM((bt, Hp), jnp.float32)],
        compiler_params=pltpu.CompilerParams(
            dimension_semantics=("parallel", "arbitrary"),
            vmem_limit_bytes=vmem_limit),
    )(gx, h0_p, c0_p, wh_p)

    h_seq = h_seq_p[:, :B, :H]
    if return_c_seq:
        return h_seq, c_p[:, :B, :H]
    return h_seq, c_p[:B, :H]


def w_lstm_cell(x, h, c_prev, w_x, w_h, b, *, matmul_dtype=jnp.bfloat16):
    """One LSTM-cell step (matches W_LSTM_cell.forward). Returns (h_next, c_next)."""
    h_seq, c_fin = w_lstm_sequence(x[None], h, c_prev, w_x, w_h, b,
                                   matmul_dtype=matmul_dtype, return_c_seq=False)
    return h_seq[0], c_fin


def init_params(key, input_len, hidden_len, dtype=jnp.float32):
    """Deterministic synthetic parameters matching W_LSTM_cell.__init__ shapes.

    Per gate g in {input, forget, newmemory, output}:
      linear_g_x : weight (hidden_len, input_len), bias (hidden_len,)
      linear_g_h : weight (hidden_len, hidden_len), no bias
    Stored transposed & concatenated along the output axis in gate order [i, f, g, o].
    """
    ks = jax.random.split(key, 12)
    scale_x = 1.0 / jnp.sqrt(input_len)
    scale_h = 1.0 / jnp.sqrt(hidden_len)

    def u(k, shape, s):
        return jax.random.uniform(k, shape, dtype, minval=-s, maxval=s)

    wx_list, wh_list, b_list = [], [], []
    for g in range(4):
        wx_list.append(u(ks[3 * g + 0], (input_len, hidden_len), scale_x))
        wh_list.append(u(ks[3 * g + 1], (hidden_len, hidden_len), scale_h))
        b_list.append(u(ks[3 * g + 2], (1, hidden_len), scale_x))
    w_x = jnp.concatenate(wx_list, axis=1)   # (input_len, 4H)
    w_h = jnp.concatenate(wh_list, axis=1)   # (hidden_len, 4H)
    b = jnp.concatenate(b_list, axis=1)      # (1, 4H)
    return w_x, w_h, b


_HI = jax.lax.Precision.HIGHEST


def _reference_cell(x, h, c_prev, w_x, w_h, b):
    H = h.shape[-1]
    gates = jnp.dot(x, w_x, precision=_HI) + jnp.dot(h, w_h, precision=_HI) + b
    i = jax.nn.sigmoid(gates[:, 0 * H:1 * H])
    f = jax.nn.sigmoid(gates[:, 1 * H:2 * H])
    g = jnp.tanh(gates[:, 2 * H:3 * H])
    o = jax.nn.sigmoid(gates[:, 3 * H:4 * H])
    c_next = f * c_prev + i * g
    h_next = o * jnp.tanh(c_next)
    return h_next, c_next


def _reference_sequence(xs, h0, c0, w_x, w_h, b):
    h, c = h0, c0
    hs, cs = [], []
    for t in range(xs.shape[0]):
        h, c = _reference_cell(xs[t], h, c, w_x, w_h, b)
        hs.append(h)
        cs.append(c)
    return jnp.stack(hs), jnp.stack(cs)


if __name__ == "__main__":
    B, INPUT_LEN, HIDDEN_LEN, T = 2, 16, 32, 8

    key = jax.random.PRNGKey(0)
    k_x, k_h, k_c, k_p = jax.random.split(key, 4)

    xs = jax.random.normal(k_x, (T, B, INPUT_LEN), jnp.float32)
    h0 = jax.random.normal(k_h, (B, HIDDEN_LEN), jnp.float32)
    c0 = jax.random.normal(k_c, (B, HIDDEN_LEN), jnp.float32)
    w_x, w_h, b = init_params(k_p, INPUT_LEN, HIDDEN_LEN)

    hs_ref, cs_ref = _reference_sequence(xs, h0, c0, w_x, w_h, b)
    h1_ref, c1_ref = _reference_cell(xs[0], h0, c0, w_x, w_h, b)

    # 1) Single cell step (the module's forward), f32 matmul path.
    h1, c1 = w_lstm_cell(xs[0], h0, c0, w_x, w_h, b, matmul_dtype=jnp.float32)
    jax.block_until_ready((h1, c1))
    assert jnp.allclose(h1, h1_ref, atol=1e-3, rtol=1e-3)
    assert jnp.allclose(c1, c1_ref, atol=1e-3, rtol=1e-3)

    # 2) Fused T-step sequence, f32 matmuls, final-c-only writeback.
    hs, c_last = w_lstm_sequence(xs, h0, c0, w_x, w_h, b, matmul_dtype=jnp.float32)
    jax.block_until_ready((hs, c_last))
    assert jnp.allclose(hs, hs_ref, atol=1e-3, rtol=1e-3)
    assert jnp.allclose(c_last, cs_ref[-1], atol=1e-3, rtol=1e-3)

    # 3) Per-step c writeback path.
    hs2, cs2 = w_lstm_sequence(xs, h0, c0, w_x, w_h, b, matmul_dtype=jnp.float32,
                               return_c_seq=True)
    jax.block_until_ready((hs2, cs2))
    assert jnp.allclose(cs2, cs_ref, atol=1e-3, rtol=1e-3)

    # 4) Default bf16-matmul path (f32 accumulation + f32 recurrence carry).
    hs_bf, c_bf = w_lstm_sequence(xs, h0, c0, w_x, w_h, b)
    jax.block_until_ready((hs_bf, c_bf))
    assert jnp.allclose(hs_bf, hs_ref, atol=1e-1, rtol=1e-1)
    assert jnp.allclose(c_bf, cs_ref[-1], atol=1e-1, rtol=1e-1)

    print("KERNEL_OK")
</pallas_src>

<mosaic_0001>
module attributes {stable_mosaic.version = 11 : i64} {
  func.func @_lstm_recur_kernel(%arg0: i32, %arg1: i32, %arg2: memref<1x16x512xf32, #tpu.memory_space<vmem>>, %arg3: memref<16x128xf32, #tpu.memory_space<vmem>>, %arg4: memref<16x128xf32, #tpu.memory_space<vmem>>, %arg5: memref<128x512xf32, #tpu.memory_space<vmem>>, %arg6: memref<1x16x128xf32, #tpu.memory_space<vmem>>, %arg7: memref<16x128xf32, #tpu.memory_space<vmem>>, %arg8: memref<16x128xf32, #tpu.memory_space<vmem>>, %arg9: memref<16x128xf32, #tpu.memory_space<vmem>>) attributes {dimension_semantics = [#tpu.dimension_semantics<parallel>, #tpu.dimension_semantics<arbitrary>], iteration_bounds = array<i64: 1, 1>, scalar_prefetch = 0 : i64, scratch_operands = 2 : i64, tpu.core_type = #tpu.core_type<tc>, window_params = [{transform_indices = @transform_0, window_bounds = array<i64: 1, 16, 512>}, {pipeline_mode = #tpu.pipeline_mode<synchronous>, transform_indices = @transform_1, window_bounds = array<i64: 16, 128>}, {pipeline_mode = #tpu.pipeline_mode<synchronous>, transform_indices = @transform_2, window_bounds = array<i64: 16, 128>}, {pipeline_mode = #tpu.pipeline_mode<synchronous>, transform_indices = @transform_3, window_bounds = array<i64: 128, 512>}, {transform_indices = @transform_4, window_bounds = array<i64: 1, 16, 128>}, {transform_indices = @transform_5, window_bounds = array<i64: 16, 128>}]} {
    %c0_i32 = arith.constant 0 : i32
    %0 = arith.cmpi eq, %arg1, %c0_i32 : i32
    %1 = arith.extui %0 : i1 to i32
    %c0_i32_0 = arith.constant 0 : i32
    %2 = arith.cmpi ne, %1, %c0_i32_0 : i32
    scf.if %2 {
      %c0_21 = arith.constant 0 : index
      %c0_22 = arith.constant 0 : index
      %41 = vector.load %arg3[%c0_21, %c0_22] : memref<16x128xf32, #tpu.memory_space<vmem>>, vector<16x128xf32>
      %c0_23 = arith.constant 0 : index
      %c0_24 = arith.constant 0 : index
      %42 = vector.load %arg8[%c0_23, %c0_24] : memref<16x128xf32, #tpu.memory_space<vmem>>, vector<16x128xf32>
      tpu.vector_store %arg8[%c0_23, %c0_24], %41 {strides = array<i32>} : memref<16x128xf32, #tpu.memory_space<vmem>>, vector<16x128xf32>,
      %c0_25 = arith.constant 0 : index
      %c0_26 = arith.constant 0 : index
      %43 = vector.load %arg4[%c0_25, %c0_26] : memref<16x128xf32, #tpu.memory_space<vmem>>, vector<16x128xf32>
      %c0_27 = arith.constant 0 : index
      %c0_28 = arith.constant 0 : index
      %44 = vector.load %arg9[%c0_27, %c0_28] : memref<16x128xf32, #tpu.memory_space<vmem>>, vector<16x128xf32>
      tpu.vector_store %arg9[%c0_27, %c0_28], %43 {strides = array<i32>} : memref<16x128xf32, #tpu.memory_space<vmem>>, vector<16x128xf32>,
    } else {
    }
    %c0 = arith.constant 0 : index
    %c0_1 = arith.constant 0 : index
    %3 = vector.load %arg8[%c0, %c0_1] : memref<16x128xf32, #tpu.memory_space<vmem>>, vector<16x128xf32>
    %c0_2 = arith.constant 0 : index
    %c0_3 = arith.constant 0 : index
    %4 = vector.load %arg9[%c0_2, %c0_3] : memref<16x128xf32, #tpu.memory_space<vmem>>, vector<16x128xf32>
    %c0_4 = arith.constant 0 : index
    %c0_5 = arith.constant 0 : index
    %c0_6 = arith.constant 0 : index
    %5 = vector.load %arg2[%c0_4, %c0_5, %c0_6] : memref<1x16x512xf32, #tpu.memory_space<vmem>>, vector<1x16x512xf32>
    %6 = vector.shape_cast %5 : vector<1x16x512xf32> to vector<16x512xf32>
    %c0_7 = arith.constant 0 : index
    %c0_8 = arith.constant 0 : index
    %7 = vector.load %arg5[%c0_7, %c0_8] : memref<128x512xf32, #tpu.memory_space<vmem>>, vector<128x512xf32>
    %cst = arith.constant dense<0.000000e+00> : vector<16x512xf32>
    %8 = tpu.matmul %3, %7, %cst {dimension_numbers = #tpu.dot_dimension_numbers<[1], [0], [0], [1], [0, 0, 1, 1], [], []>} : vector<16x128xf32>, vector<128x512xf32>, vector<16x512xf32> -> vector<16x512xf32>
    %9 = arith.addf %6, %8 : vector<16x512xf32>
    %10 = vector.extract_strided_slice %9 {offsets = [0, 0], sizes = [16, 128], strides = [1, 1]} : vector<16x512xf32> to vector<16x128xf32>
    %11 = arith.negf %10 : vector<16x128xf32>
    %12 = math.exp %11 : vector<16x128xf32>
    %cst_9 = arith.constant 1.000000e+00 : f32
    %13 = vector.broadcast %cst_9 : f32 to vector<16x128xf32>
    %14 = arith.addf %13, %12 : vector<16x128xf32>
    %15 = arith.divf %13, %14 : vector<16x128xf32>
    %16 = vector.extract_strided_slice %9 {offsets = [0, 128], sizes = [16, 128], strides = [1, 1]} : vector<16x512xf32> to vector<16x128xf32>
    %17 = arith.negf %16 : vector<16x128xf32>
    %18 = math.exp %17 : vector<16x128xf32>
    %cst_10 = arith.constant 1.000000e+00 : f32
    %19 = vector.broadcast %cst_10 : f32 to vector<16x128xf32>
    %20 = arith.addf %19, %18 : vector<16x128xf32>
    %21 = arith.divf %19, %20 : vector<16x128xf32>
    %22 = vector.extract_strided_slice %9 {offsets = [0, 256], sizes = [16, 128], strides = [1, 1]} : vector<16x512xf32> to vector<16x128xf32>
    %23 = math.tanh %22 : vector<16x128xf32>
    %24 = vector.extract_strided_slice %9 {offsets = [0, 384], sizes = [16, 128], strides = [1, 1]} : vector<16x512xf32> to vector<16x128xf32>
    %25 = arith.negf %24 : vector<16x128xf32>
    %26 = math.exp %25 : vector<16x128xf32>
    %cst_11 = arith.constant 1.000000e+00 : f32
    %27 = vector.broadcast %cst_11 : f32 to vector<16x128xf32>
    %28 = arith.addf %27, %26 : vector<16x128xf32>
    %29 = arith.divf %27, %28 : vector<16x128xf32>
    %30 = arith.mulf %21, %4 : vector<16x128xf32>
    %31 = arith.mulf %15, %23 : vector<16x128xf32>
    %32 = arith.addf %30, %31 : vector<16x128xf32>
    %33 = math.tanh %32 : vector<16x128xf32>
    %34 = arith.mulf %29, %33 : vector<16x128xf32>
    %c0_12 = arith.constant 0 : index
    %c0_13 = arith.constant 0 : index
    %35 = vector.load %arg8[%c0_12, %c0_13] : memref<16x128xf32, #tpu.memory_space<vmem>>, vector<16x128xf32>
    tpu.vector_store %arg8[%c0_12, %c0_13], %34 {strides = array<i32>} : memref<16x128xf32, #tpu.memory_space<vmem>>, vector<16x128xf32>,
    %c0_14 = arith.constant 0 : index
    %c0_15 = arith.constant 0 : index
    %36 = vector.load %arg9[%c0_14, %c0_15] : memref<16x128xf32, #tpu.memory_space<vmem>>, vector<16x128xf32>
    tpu.vector_store %arg9[%c0_14, %c0_15], %32 {strides = array<i32>} : memref<16x128xf32, #tpu.memory_space<vmem>>, vector<16x128xf32>,
    %c0_16 = arith.constant 0 : index
    %c0_17 = arith.constant 0 : index
    %c0_18 = arith.constant 0 : index
    %37 = vector.load %arg6[%c0_16, %c0_17, %c0_18] : memref<1x16x128xf32, #tpu.memory_space<vmem>>, vector<1x16x128xf32>
    %38 = vector.shape_cast %37 : vector<1x16x128xf32> to vector<16x128xf32>
    %39 = vector.shape_cast %34 : vector<16x128xf32> to vector<1x16x128xf32>
    tpu.vector_store %arg6[%c0_16, %c0_17, %c0_18], %39 {strides = array<i32>} : memref<1x16x128xf32, #tpu.memory_space<vmem>>, vector<1x16x128xf32>,
    %c0_19 = arith.constant 0 : index
    %c0_20 = arith.constant 0 : index
    %40 = vector.load %arg7[%c0_19, %c0_20] : memref<16x128xf32, #tpu.memory_space<vmem>>, vector<16x128xf32>
    tpu.vector_store %arg7[%c0_19, %c0_20], %32 {strides = array<i32>} : memref<16x128xf32, #tpu.memory_space<vmem>>, vector<16x128xf32>,
    return
  }
  func.func @transform_0(%arg0: i32, %arg1: i32) -> (i32, i32, i32) {
    %c0_i32 = arith.constant 0 : i32
    %c0_i32_0 = arith.constant 0 : i32
    return %arg1, %arg0, %c0_i32 : i32, i32, i32
  }
  func.func @transform_1(%arg0: i32, %arg1: i32) -> (i32, i32) {
    %c0_i32 = arith.constant 0 : i32
    %c0_i32_0 = arith.constant 0 : i32
    return %arg0, %c0_i32 : i32, i32
  }
  func.func @transform_2(%arg0: i32, %arg1: i32) -> (i32, i32) {
    %c0_i32 = arith.constant 0 : i32
    %c0_i32_0 = arith.constant 0 : i32
    return %arg0, %c0_i32 : i32, i32
  }
  func.func @transform_3(%arg0: i32, %arg1: i32) -> (i32, i32) {
    %c0_i32 = arith.constant 0 : i32
    %c0_i32_0 = arith.constant 0 : i32
    %c0_i32_1 = arith.constant 0 : i32
    return %c0_i32, %c0_i32_0 : i32, i32
  }
  func.func @transform_4(%arg0: i32, %arg1: i32) -> (i32, i32, i32) {
    %c0_i32 = arith.constant 0 : i32
    %c0_i32_0 = arith.constant 0 : i32
    return %arg1, %arg0, %c0_i32 : i32, i32, i32
  }
  func.func @transform_5(%arg0: i32, %arg1: i32) -> (i32, i32) {
    %c0_i32 = arith.constant 0 : i32
    %c0_i32_0 = arith.constant 0 : i32
    return %arg0, %c0_i32 : i32, i32
  }
}

</mosaic_0001>

<bundles_post_ra>
// kernel: tpu_custom_call.1
= control target key start
LH: loop header
LB: loop body
LE: loop exit
PB: predicated region body
PF: predicated region fallthrough
CT: control target
= control target key end

     0   :  { %11 = vsyncpa [#allocation5], 0  ;;  %s772_s0 = inlined_call_operand.hbm [shape: f32[1,16,512], index: 0, kind: input, shape index: {}]   ;;  %s773_s1 = inlined_call_operand.hbm [shape: f32[16,128], index: 1, kind: input, shape index: {}]   ;;  %s774_s2 = inlined_call_operand.hbm [shape: f32[16,128], index: 2, kind: input, shape index: {}]   ;;  %s775_s3 = inlined_call_operand.hbm [shape: f32[128,512], index: 3, kind: input, shape index: {}]   ;;  %s776_s4 = inlined_call_operand.hbm [shape: f32[1,16,128], index: 4, kind: output, shape index: {0}]   ;;  %s777_s5 = inlined_call_operand.hbm [shape: f32[16,128], index: 5, kind: output, shape index: {1}]  }
   0x1   :  { %12 = vsyncpa [#allocation8], 0 }
   0x2   :  { %13 = vsyncpa [#allocation11], 0 }
   0x3   :  { %14 = vsyncpa [#allocation6], 0  ;;  %s33_s20 = sshll.u32 %s773_s1, 4  ;;  %s34_s20 = int_to_ptr.hbm [resolvable:$true] %s33_s20 }
   0x4   :  { %15 = vsyncpa [#allocation14], 0  ;;  %s647_s21 = smov [#allocation7]   ;;  %s20_s25 = sshll.u32 %s772_s0, 4  ;;  %s21_s25 = int_to_ptr.hbm [resolvable:$true] %s20_s25 }
   0x5   :  { %s35_s22 = sshll.u32 %s647_s21, 4  ;;  %s648_s26 = smov 128   ;;  %s36_s22 = int_to_ptr.vmem [resolvable:$true] %s35_s22 }
   0x6   :  { %s649_s27 = smov 8   ;;  %s650_s28 = smov [#allocation4]  }
   0x7   :  { %41 = dma.hbm_to_vmem [thread:$0]  %s34_s20, 256, %s36_s22, [#allocation8], %s648_s26, %s648_s26, %s649_s27  }
   0x8   :  { %s22_s29 = sshll.u32 %s650_s28, 4  ;;  %s651_s1 = smov 512   ;;  %s23_s29 = int_to_ptr.vmem [resolvable:$true] %s22_s29 }
   0x9   :  { %s652_s30 = smov 32   ;;  %s46_s8 = sshll.u32 %s774_s2, 4  ;;  %s47_s8 = int_to_ptr.hbm [resolvable:$true] %s46_s8 }
   0xa   :  { %28 = dma.hbm_to_vmem [thread:$0]  %s21_s25, 1024, %s23_s29, [#allocation5], %s651_s1, %s651_s1, %s652_s30  }
   0xb   :  { %s653_s9 = smov [#allocation9]   ;;  %s59_s12 = sshll.u32 %s775_s3, 4  ;;  %s60_s12 = int_to_ptr.hbm [resolvable:$true] %s59_s12 }
   0xc   :  { %s48_s0 = sshll.u32 %s653_s9, 4  ;;  %s654_s13 = smov [#allocation10]   ;;  %s49_s0 = int_to_ptr.vmem [resolvable:$true] %s48_s0 }
   0xd   :  { %54 = dma.hbm_to_vmem [thread:$0]  %s47_s8, 256, %s49_s0, [#allocation8], %s648_s26, %s648_s26, %s649_s27  }
   0xe   :  { %s61_s14 = sshll.u32 %s654_s13, 4  ;;  %s62_s14 = int_to_ptr.vmem [resolvable:$true] %s61_s14 }
   0xf   :  { %67 = dma.hbm_to_vmem [thread:$0]  %s60_s12, 8192, %s62_s14, [#allocation11], %s651_s1, %s651_s1, %s652_s30  }
  0x10   :  { %637 = dma.done.wait [#allocation5], 1024  }
  0x11   :  { %638 = vsyncadd [#allocation5], 4294966272 }
  0x12   :  { %639 = dma.done.wait [#allocation8], 512  }
  0x13   :  { %640 = vsyncadd [#allocation8], 4294966784 }
  0x14   :  { %641 = dma.done.wait [#allocation11], 8192  }
  0x15   :  { %642 = vsyncadd [#allocation11], 4294959104  ;;  %v168_v0 = vld [vmem:[#allocation10 + $0x1e0] sm:$0xff]  ;;  %v169_v1 = vld [vmem:[#allocation10 + $0x1e8] sm:$0xff]  ;;  %s655_s2 = smov [#allocation13]   ;;  %s425_s17 = sshll.u32 %s777_s5, 4  ;;  %s426_s17 = int_to_ptr.hbm [resolvable:$true] %s425_s17 }
  0x16   :  { %v171_v2 = vld [vmem:[#allocation10 + $0x1f8] sm:$0xff]  ;;  %172 = vmatpush.msra.mxu0 %v168_v0  ;;  %195 = vmatpush.msra.mxu1 %v169_v1  ;;  %v164_v3 = vld [vmem:[#allocation10 + $0x1c0] sm:$0xff]  ;;  %v165_v4 = vld [vmem:[#allocation10 + $0x1c8] sm:$0xff]  ;;  %s423_s3 = sshll.u32 %s655_s2, 4  ;;  %s656_s5 = smov [#allocation12]   ;;  %s424_s3 = int_to_ptr.vmem [resolvable:$true] %s423_s3 }
  0x17   :  { %v167_v5 = vld [vmem:[#allocation10 + $0x1d8] sm:$0xff]  ;;  %241 = vmatpush.msra.mxu3 %v171_v2  ;;  %v160_v6 = vld [vmem:[#allocation10 + $0x1a0] sm:$0xff]  ;;  %v161_v7 = vld [vmem:[#allocation10 + $0x1a8] sm:$0xff]  ;;  %s410_s18 = sshll.u32 %s656_s5, 4  ;;  %s412_s21 = sshll.u32 %s776_s4, 4  ;;  %s411_s18 = int_to_ptr.vmem [resolvable:$true] %s410_s18  ;;  %s413_s21 = int_to_ptr.hbm [resolvable:$true] %s412_s21 }
  0x18   :  { %173 = vmatpush.msra.mxu0 %v164_v3  ;;  %196 = vmatpush.msra.mxu1 %v165_v4  ;;  %v163_v8 = vld [vmem:[#allocation10 + $0x1b8] sm:$0xff]  ;;  %v156_v9 = vld [vmem:[#allocation10 + $0x180] sm:$0xff]  ;;  %v157_v10 = vld [vmem:[#allocation10 + $0x188] sm:$0xff] }
  0x19   :  { %242 = vmatpush.msra.mxu3 %v167_v5  ;;  %v159_v11 = vld [vmem:[#allocation10 + $0x198] sm:$0xff]  ;;  %v152_v12 = vld [vmem:[#allocation10 + $0x160] sm:$0xff]  ;;  %v153_v13 = vld [vmem:[#allocation10 + $0x168] sm:$0xff] }
  0x1a   :  { %174 = vmatpush.msra.mxu0 %v160_v6  ;;  %197 = vmatpush.msra.mxu1 %v161_v7  ;;  %v155_v14 = vld [vmem:[#allocation10 + $0x178] sm:$0xff]  ;;  %v148_v15 = vld [vmem:[#allocation10 + $0x140] sm:$0xff]  ;;  %v149_v16 = vld [vmem:[#allocation10 + $0x148] sm:$0xff] }
  0x1b   :  { %243 = vmatpush.msra.mxu3 %v163_v8  ;;  %v170_v17 = vld [vmem:[#allocation10 + $0x1f0] sm:$0xff]  ;;  %v151_v18 = vld [vmem:[#allocation10 + $0x158] sm:$0xff]  ;;  %v144_v20 = vld [vmem:[#allocation10 + $0x120] sm:$0xff] }
  0x1c   :  { %175 = vmatpush.msra.mxu0 %v156_v9  ;;  %198 = vmatpush.msra.mxu1 %v157_v10  ;;  %v166_v19 = vld [vmem:[#allocation10 + $0x1d0] sm:$0xff]  ;;  %v145_v21 = vld [vmem:[#allocation10 + $0x128] sm:$0xff]  ;;  %v147_v22 = vld [vmem:[#allocation10 + $0x138] sm:$0xff] }
  0x1d   :  { %244 = vmatpush.msra.mxu3 %v159_v11  ;;  %218 = vmatpush.msra.mxu2 %v170_v17  ;;  %v162_v23 = vld [vmem:[#allocation10 + $0x1b0] sm:$0xff]  ;;  %v140_v24 = vld [vmem:[#allocation10 + $0x100] sm:$0xff]  ;;  %v141_v25 = vld [vmem:[#allocation10 + $0x108] sm:$0xff] }
  0x1e   :  { %176 = vmatpush.msra.mxu0 %v152_v12  ;;  %199 = vmatpush.msra.mxu1 %v153_v13  ;;  %v143_v26 = vld [vmem:[#allocation10 + $0x118] sm:$0xff]  ;;  %v158_v27 = vld [vmem:[#allocation10 + $0x190] sm:$0xff]  ;;  %v136_v28 = vld [vmem:[#allocation10 + $0xe0] sm:$0xff] }
  0x1f   :  { %245 = vmatpush.msra.mxu3 %v155_v14  ;;  %219 = vmatpush.msra.mxu2 %v166_v19  ;;  %v137_v29 = vld [vmem:[#allocation10 + $0xe8] sm:$0xff]  ;;  %v139_v30 = vld [vmem:[#allocation10 + $0xf8] sm:$0xff]  ;;  %v154_v31 = vld [vmem:[#allocation10 + $0x170] sm:$0xff] }
  0x20   :  { %177 = vmatpush.msra.mxu0 %v148_v15  ;;  %200 = vmatpush.msra.mxu1 %v149_v16  ;;  %v132_v32 = vld [vmem:[#allocation10 + $0xc0] sm:$0xff]  ;;  %v133_v33 = vld [vmem:[#allocation10 + $0xc8] sm:$0xff]  ;;  %v135_v34 = vld [vmem:[#allocation10 + $0xd8] sm:$0xff] }
  0x21   :  { %246 = vmatpush.msra.mxu3 %v151_v18  ;;  %220 = vmatpush.msra.mxu2 %v162_v23  ;;  %v150_v35 = vld [vmem:[#allocation10 + $0x150] sm:$0xff]  ;;  %v128_v36 = vld [vmem:[#allocation10 + $0xa0] sm:$0xff]  ;;  %v129_v37 = vld [vmem:[#allocation10 + $0xa8] sm:$0xff] }
  0x22   :  { %178 = vmatpush.msra.mxu0 %v144_v20  ;;  %201 = vmatpush.msra.mxu1 %v145_v21  ;;  %v131_v38 = vld [vmem:[#allocation10 + $0xb8] sm:$0xff]  ;;  %v146_v39 = vld [vmem:[#allocation10 + $0x130] sm:$0xff]  ;;  %v124_v40 = vld [vmem:[#allocation10 + $0x80] sm:$0xff] }
  0x23   :  { %247 = vmatpush.msra.mxu3 %v147_v22  ;;  %221 = vmatpush.msra.mxu2 %v158_v27  ;;  %v125_v41 = vld [vmem:[#allocation10 + $0x88] sm:$0xff]  ;;  %v127_v42 = vld [vmem:[#allocation10 + $0x98] sm:$0xff]  ;;  %v142_v43 = vld [vmem:[#allocation10 + $0x110] sm:$0xff] }
  0x24   :  { %179 = vmatpush.msra.mxu0 %v140_v24  ;;  %202 = vmatpush.msra.mxu1 %v141_v25  ;;  %v120_v44 = vld [vmem:[#allocation10 + $0x60] sm:$0xff]  ;;  %v121_v45 = vld [vmem:[#allocation10 + $0x68] sm:$0xff]  ;;  %v123_v46 = vld [vmem:[#allocation10 + $0x78] sm:$0xff] }
  0x25   :  { %248 = vmatpush.msra.mxu3 %v143_v26  ;;  %222 = vmatpush.msra.mxu2 %v154_v31  ;;  %v138_v47 = vld [vmem:[#allocation10 + $0xf0] sm:$0xff]  ;;  %v116_v48 = vld [vmem:[#allocation10 + $0x40] sm:$0xff]  ;;  %v117_v49 = vld [vmem:[#allocation10 + $0x48] sm:$0xff] }
  0x26   :  { %180 = vmatpush.msra.mxu0 %v136_v28  ;;  %203 = vmatpush.msra.mxu1 %v137_v29  ;;  %v119_v50 = vld [vmem:[#allocation10 + $0x58] sm:$0xff]  ;;  %v134_v51 = vld [vmem:[#allocation10 + $0xd0] sm:$0xff]  ;;  %v112_v52 = vld [vmem:[#allocation10 + $0x20] sm:$0xff] }
  0x27   :  { %249 = vmatpush.msra.mxu3 %v139_v30  ;;  %223 = vmatpush.msra.mxu2 %v150_v35  ;;  %v113_v53 = vld [vmem:[#allocation10 + $0x28] sm:$0xff]  ;;  %v115_v54 = vld [vmem:[#allocation10 + $0x38] sm:$0xff]  ;;  %v130_v55 = vld [vmem:[#allocation10 + $0xb0] sm:$0xff] }
  0x28   :  { %181 = vmatpush.msra.mxu0 %v132_v32  ;;  %204 = vmatpush.msra.mxu1 %v133_v33  ;;  %v108_v56 = vld [vmem:[#allocation10] sm:$0xff]  ;;  %v109_v57 = vld [vmem:[#allocation10 + $0x8] sm:$0xff]  ;;  %v111_v58 = vld [vmem:[#allocation10 + $0x18] sm:$0xff] }
  0x29   :  { %250 = vmatpush.msra.mxu3 %v135_v34  ;;  %224 = vmatpush.msra.mxu2 %v146_v39  ;;  %v88_v59 = vld [vmem:[#allocation7] sm:$0xff]  ;;  %v126_v60 = vld [vmem:[#allocation10 + $0x90] sm:$0xff]  ;;  %v89_v63 = vld [vmem:[#allocation7 + $0x8] sm:$0xff] }
  0x2a   :  { %182 = vmatpush.msra.mxu0 %v128_v36  ;;  %205 = vmatpush.msra.mxu1 %v129_v37  ;;  %v122_v61 = vld [vmem:[#allocation10 + $0x70] sm:$0xff]  ;;  %v100_v2 = vld [vmem:[#allocation4] sm:$0xff]  ;;  %v101_v3 = vld [vmem:[#allocation4 + $0x8] sm:$0xff] }
  0x2b   :  { %251 = vmatpush.msra.mxu3 %v131_v38  ;;  %225 = vmatpush.msra.mxu2 %v142_v43  ;;  %v118_v62 = vld [vmem:[#allocation10 + $0x50] sm:$0xff]  ;;  %v103_v10 = vld [vmem:[#allocation4 + $0x18] sm:$0xff]  ;;  %v104_v11 = vld [vmem:[#allocation4 + $0x20] sm:$0xff] }
  0x2c   :  { %183 = vmatpush.msra.mxu0 %v124_v40  ;;  %206 = vmatpush.msra.mxu1 %v125_v41  ;;  %v114_v0 = vld [vmem:[#allocation10 + $0x30] sm:$0xff]  ;;  %v105_v13 = vld [vmem:[#allocation4 + $0x28] sm:$0xff]  ;;  %v107_v26 = vld [vmem:[#allocation4 + $0x38] sm:$0xff] }
  0x2d   :  { %252 = vmatpush.msra.mxu3 %v127_v42  ;;  %226 = vmatpush.msra.mxu2 %v138_v47  ;;  %v110_v1 = vld [vmem:[#allocation10 + $0x10] sm:$0xff] }
  0x2e   :  { %184 = vmatpush.msra.mxu0 %v120_v44  ;;  %207 = vmatpush.msra.mxu1 %v121_v45  ;;  %v102_v29 = vld [vmem:[#allocation4 + $0x10] sm:$0xff] }
  0x2f   :  { %253 = vmatpush.msra.mxu3 %v123_v46  ;;  %227 = vmatpush.msra.mxu2 %v134_v51 }
  0x30   :  { %185 = vmatpush.msra.mxu0 %v116_v48  ;;  %208 = vmatpush.msra.mxu1 %v117_v49  ;;  %v106_v48 = vld [vmem:[#allocation4 + $0x30] sm:$0xff] }
  0x31   :  { %254 = vmatpush.msra.mxu3 %v119_v50  ;;  %228 = vmatpush.msra.mxu2 %v130_v55 }
  0x32   :  { %186 = vmatpush.msra.mxu0 %v112_v52  ;;  %209 = vmatpush.msra.mxu1 %v113_v53 }
  0x33   :  { %255 = vmatpush.msra.mxu3 %v115_v54  ;;  %229 = vmatpush.msra.mxu2 %v126_v60 }
  0x34   :  { %187 = vmatpush.msra.mxu0 %v108_v56  ;;  %210 = vmatpush.msra.mxu1 %v109_v57 }
  0x35   :  { %256 = vmatpush.msra.mxu3 %v111_v58  ;;  %188 = vmatmul.f32.vlgmr.msra.gmra.mxu0 %v88_v59 }
  0x36   :  { %211 = vmatmul.f32.vlgmr.msra.gmra.mxu1 %v88_v59  ;;  %257 = vmatmul.f32.vlgmr.msra.gmra.mxu3 %v88_v59 }
  0x37   :  { %230 = vmatpush.msra.mxu2 %v122_v61 }
  0x39   :  { %231 = vmatpush.msra.mxu2 %v118_v62 }
  0x3b   :  { %232 = vmatpush.msra.mxu2 %v114_v0 }
  0x3d   :  { %191 = vmatmul.f32.gmra.mxu0 %v89_v63  ;;  %233 = vmatpush.msra.mxu2 %v110_v1 }
  0x3e   :  { %214 = vmatmul.f32.gmra.mxu1 %v89_v63  ;;  %260 = vmatmul.f32.gmra.mxu3 %v89_v63 }
  0x3f   :  { %234 = vmatmul.f32.vlgmr.msra.gmra.mxu2 %v88_v59 }
  0x47   :  { %237 = vmatmul.f32.gmra.mxu2 %v89_v63 }
  0xb2   :  { %v189_v4 = vpop.f32.mrf.mxu0 }
  0xb3   :  { %v264_v5 = vadd.f32 %v189_v4, %v100_v2  ;;  %v212_v6 = vpop.f32.mrf.mxu1  ;;  %v92_v2 = vld [vmem:[#allocation9] sm:$0xff] }
  0xb4   :  { %v265_v7 = vadd.f32 %v212_v6, %v101_v3 }
  0xb5   :  { %v445_v8 = vmul.f32 -1.442695, %v264_v5 }
  0xb6   :  { %v447_v9 = vmul.f32 -1.442695, %v265_v7 }
  0xb7   :  { %461 = vpow2.f32 %v445_v8 }
  0xb8   :  { %463 = vpow2.f32 %v447_v9 }
  0xb9   :  { %v258_v12 = vpop.f32.mrf.mxu3 }
  0xba   :  { %v267_v14 = vadd.f32 %v258_v12, %v103_v10  ;;  %v192_v15 = vpop.f32.mrf.mxu0 }
  0xbb   :  { %v268_v16 = vadd.f32 %v192_v15, %v104_v11  ;;  %v215_v17 = vpop.f32.mrf.mxu1 }
  0xbc   :  { %v449_v18 = vmul.f32 -1.442695, %v267_v14  ;;  %v269_v19 = vadd.f32 %v215_v17, %v105_v13 }
  0xbd   :  { %v462_v20 = vpop.eup %461  ;;  %v446_v21 = vmul.f32 -1.442695, %v268_v16 }
  0xbe   :  { %v464_v22 = vpop.eup %463  ;;  %v278_v23 = vadd.f32 1.0, %v462_v20  ;;  %465 = vpow2.f32 %v449_v18  ;;  %v448_v24 = vmul.f32 -1.442695, %v269_v19 }
  0xbf   :  { %v316_v25 = vadd.f32 1.0, %v464_v22  ;;  %467 = vpow2.f32 %v446_v21 }
  0xc0   :  { %469 = vrcp.f32 %v278_v23  ;;  %v289_v44 = vand.u32 2147483647, %v278_v23  ;;  %v291_v47 = vand.u32 2147483648, %v278_v23  ;;  %vm285_vm3 = vweird.f32 %v278_v23 }
  0xc1   :  { %471 = vrcp.f32 %v316_v25  ;;  %v261_v27 = vpop.f32.mrf.mxu3  ;;  %v329_v46 = vand.u32 2147483648, %v316_v25  ;;  %v327_v50 = vand.u32 2147483647, %v316_v25  ;;  %vm323_vm1 = vweird.f32 %v316_v25 }
  0xc2   :  { %473 = vpow2.f32 %v448_v24  ;;  %v271_v28 = vadd.f32 %v261_v27, %v107_v26  ;;  %v235_v30 = vpop.f32.mrf.mxu2  ;;  %vm718_vm4 = vcmp.eq.f32.partialorder %v289_v44, 8.507059e+37  ;;  %v292_v62 = vor.u32 1.1754944e-38, %v291_v47 }
  0xc3   :  { %v266_v35 = vadd.f32 %v235_v30, %v102_v29  ;;  %v330_v60 = vor.u32 1.1754944e-38, %v329_v46  ;;  %vm328_vm7 = vcmp.eq.f32.partialorder %v327_v50, 8.507059e+37 }
  0xc4   :  { %v466_v31 = vpop.eup %465  ;;  %v450_v32 = vmul.f32 -1.442695, %v271_v28 }
  0xc5   :  { %v468_v33 = vpop.eup %467  ;;  %v705_v34 = vadd.f32 1.0, %v466_v31 }
  0xc6   :  { %v470_v36 = vpop.eup %469  ;;  %v707_v37 = vadd.f32 1.0, %v468_v33  ;;  %475 = vpow2.f32 %v450_v32 }
  0xc7   :  { %v472_v38 = vpop.eup %471  ;;  %v281_v39 = vmul.f32 %v470_v36, %v278_v23  ;;  %477 = vrcp.f32 %v705_v34  ;;  %vm286_vm0 = vweird.f32 %v470_v36  ;;  %v369_v17 = vand.u32 2147483648, %v705_v34 }
  0xc8   :  { %v474_v40 = vpop.eup %473  ;;  %v319_v41 = vmul.f32 %v472_v38, %v316_v25  ;;  %479 = vrcp.f32 %v707_v37  ;;  %vm324_vm2 = vweird.f32 %v472_v38  ;;  %vm287_vm5 = vmor %vm285_vm3, %vm286_vm0  ;;  %v306_v7 = vand.u32 2147483648, %v707_v37 }
  0xc9   :  { %v282_v42 = vsub.f32 1.0, %v281_v39  ;;  %v711_v43 = vadd.f32 1.0, %v474_v40  ;;  %481 = vtanh.f32 %v266_v35  ;;  %vm325_vm6 = vmor %vm323_vm1, %vm324_vm2  ;;  %vm300_vm8 = vweird.f32 %v707_v37 }
  0xca   :  { %v320_v45 = vsub.f32 1.0, %v319_v41  ;;  %v238_v51 = vpop.f32.mrf.mxu2  ;;  %v304_v16 = vand.u32 2147483647, %v707_v37  ;;  %v307_v21 = vor.u32 1.1754944e-38, %v306_v7  ;;  %vm363_vm14 = vweird.f32 %v705_v34 }
  0xcb   :  { %483 = vrcp.f32 %v711_v43  ;;  %v283_v49 = vmul.f32 %v470_v36, %v282_v42  ;;  %v270_v58 = vadd.f32 %v238_v51, %v106_v48  ;;  %v344_v19 = vand.u32 2147483648, %v711_v43 }
  0xcc   :  { %v476_v52 = vpop.eup %475  ;;  %v321_v53 = vmul.f32 %v472_v38, %v320_v45  ;;  %v342_v24 = vand.u32 2147483647, %v711_v43  ;;  %vm305_vm13 = vcmp.eq.f32.partialorder %v304_v16, 8.507059e+37  ;;  %v367_v30 = vand.u32 2147483647, %v705_v34 }
  0xcd   :  { %v714_v54 = vpop.eup %477  ;;  %v716_v55 = vadd.f32 1.0, %v476_v52  ;;  %v284_v56 = vadd.f32 %v470_v36, %v283_v49  ;;  %vm338_vm15 = vweird.f32 %v711_v43  ;;  %v370_v40 = vor.u32 1.1754944e-38, %v369_v17 }
  0xce   :  { %v480_v59 = vpop.eup %479  ;;  %v359_v61 = vmul.f32 %v714_v54, %v705_v34  ;;  %v322_v63 = vadd.f32 %v472_v38, %v321_v53  ;;  %vm364_vm10 = vweird.f32 %v714_v54  ;;  %vm343_vm2 = vcmp.eq.f32.partialorder %v342_v24, 8.507059e+37 }
  0xcf   :  { %v482_v0 = vpop.eup %481  ;;  %v296_v1 = vmul.f32 %v480_v59, %v707_v37  ;;  %485 = vrcp.f32 %v716_v55  ;;  %v288_v3 = vsel %vm287_vm5, %v470_v36, %v284_v56  ;;  %vm301_vm9 = vweird.f32 %v480_v59  ;;  %vm749_vm0 = vmor %vm363_vm14, %vm364_vm10  ;;  %v93_v37 = vld [vmem:[#allocation9 + $0x8] sm:$0xff] }
  0xd0   :  { %v360_v4 = vsub.f32 1.0, %v359_v61  ;;  %v293_v5 = vsel %vm718_vm4, %v292_v62, %v288_v3  ;;  %v326_v6 = vsel %vm325_vm6, %v472_v38, %v322_v63  ;;  %487 = vtanh.f32 %v270_v58  ;;  %vm302_vm12 = vmor %vm300_vm8, %vm301_vm9 }
  0xd1   :  { %v484_v8 = vpop.eup %483  ;;  %v297_v9 = vsub.f32 1.0, %v296_v1  ;;  %v331_v10 = vsel %vm328_vm7, %v330_v60, %v326_v6  ;;  %v390_v11 = vmul.f32 %v482_v0, %v293_v5  ;;  %v345_v36 = vor.u32 1.1754944e-38, %v344_v19 }
  0xd2   :  { %v334_v12 = vmul.f32 %v484_v8, %v711_v43  ;;  %v388_v13 = vmul.f32 %v331_v10, %v92_v2  ;;  %v361_v14 = vmul.f32 %v714_v54, %v360_v4  ;;  %vm339_vm11 = vweird.f32 %v484_v8 }
  0xd3   :  { %v298_v15 = vmul.f32 %v480_v59, %v297_v9  ;;  %vm340_vm1 = vmor %vm338_vm15, %vm339_vm11  ;;  %vm368_vm3 = vcmp.eq.f32.partialorder %v367_v30, 8.507059e+37  ;;  %v384_v49 = vand.u32 2147483648, %v716_v55  ;;  %vm378_vm5 = vweird.f32 %v716_v55 }
  0xd4   :  { %v335_v18 = vsub.f32 1.0, %v334_v12  ;;  %v392_v20 = vadd.f32 %v390_v11, %v388_v13  ;;  %v362_v25 = vadd.f32 %v714_v54, %v361_v14  ;;  %v382_v50 = vand.u32 2147483647, %v716_v55 }
  0xd5   :  { %v486_v22 = vpop.eup %485  ;;  %v299_v23 = vadd.f32 %v480_v59, %v298_v15  ;;  %v385_v52 = vor.u32 1.1754944e-38, %v384_v49 }
  0xd6   :  { %v336_v26 = vmul.f32 %v484_v8, %v335_v18  ;;  %v374_v27 = vmul.f32 %v486_v22, %v716_v55  ;;  %489 = vtanh.f32 %v392_v20  ;;  %404 = vst [vmem:[#allocation13] sm:$0xff] %v392_v20  ;;  %v488_v28 = vpop.eup %487  ;;  %v366_v38 = vsel %vm749_vm0, %v714_v54, %v362_v25 }
  0xd7   :  { %v303_v29 = vsel %vm302_vm12, %v480_v59, %v299_v23  ;;  %v371_v45 = vsel %vm368_vm3, %v370_v40, %v366_v38  ;;  %vm379_vm4 = vweird.f32 %v486_v22  ;;  %vm383_vm7 = vcmp.eq.f32.partialorder %v382_v50, 8.507059e+37 }
  0xd8   :  { %v375_v31 = vsub.f32 1.0, %v374_v27  ;;  %v308_v32 = vsel %vm305_vm13, %v307_v21, %v303_v29  ;;  %v337_v33 = vadd.f32 %v484_v8, %v336_v26  ;;  %vm380_vm6 = vmor %vm378_vm5, %vm379_vm4 }
  0xd9   :  { %v391_v39 = vmul.f32 %v488_v28, %v308_v32 }
  0xda   :  { %v341_v34 = vsel %vm340_vm1, %v484_v8, %v337_v33  ;;  %v376_v42 = vmul.f32 %v486_v22, %v375_v31 }
  0xdb   :  { %v346_v41 = vsel %vm343_vm2, %v345_v36, %v341_v34 }
  0xdc   :  { %v490_v43 = vpop.eup %489  ;;  %v389_v44 = vmul.f32 %v346_v41, %v93_v37  ;;  %v377_v48 = vadd.f32 %v486_v22, %v376_v42 }
  0xdd   :  { %v396_v46 = vmul.f32 %v490_v43, %v371_v45 }
  0xde   :  { %v393_v47 = vadd.f32 %v391_v39, %v389_v44  ;;  %v381_v51 = vsel %vm380_vm6, %v486_v22, %v377_v48 }
  0xdf   :  { %402 = vst [vmem:[#allocation12] sm:$0xff] %v396_v46  ;;  %v386_v54 = vsel %vm383_vm7, %v385_v52, %v381_v51 }
  0xe0   :  { %491 = vtanh.f32 %v393_v47  ;;  %405 = vst [vmem:[#allocation13 + $0x8] sm:$0xff] %v393_v47 }
  0xe1   :  { %431 = dma.vmem_to_hbm [thread:$0]  %s424_s3, 256, %s426_s17, [#allocation14], %s648_s26, %s648_s26, %s649_s27  }
  0xe6   :  { %v492_v53 = vpop.eup %491 }
  0xe7   :  { %v397_v56 = vmul.f32 %v492_v53, %v386_v54 }
  0xe9   :  { %403 = vst [vmem:[#allocation12 + $0x8] sm:$0xff] %v397_v56 }
  0xea   :  { %418 = dma.vmem_to_hbm [thread:$0]  %s411_s18, 256, %s413_s21, [#allocation6], %s648_s26, %s648_s26, %s649_s27  }
  0xeb   :  { %643 = dma.done.wait [#allocation6], 256  }
  0xec   :  { %644 = vsyncadd [#allocation6], 4294967040 }
  0xed   :  { %645 = dma.done.wait [#allocation14], 256  }
  0xee   :  { %646 = vsyncadd [#allocation14], 4294967040 }
  0xef   :  { %440 = vsyncpa [#allocation5], 1 }
  0xf0   :  { %441 = vsyncpa [#allocation8], 1 }
  0xf1   :  { %442 = vsyncpa [#allocation11], 1 }
  0xf2   :  { %443 = vsyncpa [#allocation6], 1 }
  0xf3   :  { %444 = vsyncpa [#allocation14], 1 }

</bundles_post_ra>
